<compile_context>
chip_gen: v5e
topology: v5e:2x2
jax: 0.10.0
libtpu: 0.0.40
codegen_flags: <defaults>
</compile_context>

<pallas_src>
import functools

import numpy as np
import jax
import jax.numpy as jnp
from jax import lax
from jax.experimental import pallas as pl
from jax.experimental.pallas import tpu as pltpu

_POS_THRESH = 0.1
_TOPK_ALL = 500      # torch.topk(pre_loss[i], 500) fallback
_TOPK_PAD = 512      # lane-padded top-k slab width fed to kernel 2
_NEG_FILLER = 1.0    # > any negated loss (-loss <= 0); sorts last (ascending)


# ----------------------------------------------------------------------------
# Kernel 1: elementwise MSE (reduce=False), negated negative-loss slab for the
#           ascending XLA sort, and per-image per-tile stats
#           (lanes 0..3 = pos_cnt, pos_sum, neg_cnt, neg_sum).
# blocks: pred/label/negm (B, TILE); stats (B, 128)
# ----------------------------------------------------------------------------
def _mse_stats_kernel(n_real, padded, pred_ref, label_ref, negm_ref, stats_ref):
    t = pl.program_id(0)
    tile = pred_ref.shape[1]

    pred = pred_ref[...].astype(jnp.float32)
    label = label_ref[...].astype(jnp.float32)
    diff = pred - label
    loss = diff * diff

    pos = label >= _POS_THRESH
    if padded:
        gidx = t * tile + lax.broadcasted_iota(jnp.int32, loss.shape, 1)
        valid = gidx < n_real
        pos = jnp.logical_and(pos, valid)
        neg = jnp.logical_and(jnp.logical_not(pos), valid)
    else:
        neg = jnp.logical_not(pos)

    # Store the NEGATED negative losses; +1.0 filler for positive / padded
    # lanes. Ascending jnp.sort then yields descending losses with no extra
    # negation passes around the XLA sort.
    negm_ref[...] = jnp.where(neg, -loss, jnp.float32(_NEG_FILLER))

    posf = pos.astype(jnp.float32)
    negf = neg.astype(jnp.float32)
    pos_cnt = jnp.sum(posf, axis=1, keepdims=True)            # (B, 1)
    pos_sum = jnp.sum(loss * posf, axis=1, keepdims=True)      # (B, 1)
    neg_cnt = jnp.sum(negf, axis=1, keepdims=True)             # (B, 1)
    neg_sum = jnp.sum(loss * negf, axis=1, keepdims=True)      # (B, 1)

    lane = lax.broadcasted_iota(jnp.int32, stats_ref.shape, 1)
    stats_ref[...] = jnp.where(lane == 0, pos_cnt,
                     jnp.where(lane == 1, pos_sum,
                     jnp.where(lane == 2, neg_cnt,
                     jnp.where(lane == 3, neg_sum, 0.0))))


# ----------------------------------------------------------------------------
# Kernel 2: per-image OHEM selection + batch reduction. Streams only the
#           prefix of the sorted-negatives slab actually needed for the
#           top-(3*pos_cnt) branch (index_map clamped via a prefetched scalar).
# inputs: lastblk (scalar prefetch, SMEM), sneg (B, TILE) negated sorted
#         negatives (ascending == descending loss), sall (B, <=512) first
#         columns of the sorted slab, stats (B, 128).
# output: (1, 1) scalar = sum over the B rows of per-image contributions.
# ----------------------------------------------------------------------------
def _ohem_kernel(lastblk_ref, sneg_ref, sall_ref, stats_ref, out_ref, topk_acc):
    t = pl.program_id(0)
    nlast = pl.num_programs(0) - 1
    tile = sneg_ref.shape[1]

    @pl.when(t == 0)
    def _():
        topk_acc[...] = jnp.zeros_like(topk_acc)

    stats = stats_ref[...]                     # (B, 128)
    pos_cnt = stats[:, 0:1]                    # float count (exact for N < 2^24)
    k3_i = 3 * pos_cnt.astype(jnp.int32)

    @pl.when(t <= lastblk_ref[0])
    def _():
        sneg = -sneg_ref[...]                  # fold negation: descending losses
        gidx = t * tile + lax.broadcasted_iota(jnp.int32, sneg.shape, 1)
        topk_acc[...] += jnp.sum(jnp.where(gidx < k3_i, sneg, 0.0),
                                 axis=1, keepdims=True)

    @pl.when(t == nlast)
    def _():
        pos_sum = stats[:, 1:2]
        neg_cnt = stats[:, 2:3]
        neg_sum = stats[:, 3:4]
        k3 = 3.0 * pos_cnt

        # top-500 mean over all losses. Only consumed when pos_cnt == 0, where
        # the sorted-negatives slab == sorted losses; when pos_cnt > 0 fillers
        # may appear here but the branch is masked out below.
        sall = -sall_ref[...]                                  # (B, <=512)
        i_all = lax.broadcasted_iota(jnp.int32, sall.shape, 1)
        top500_mean = jnp.sum(jnp.where(i_all < _TOPK_ALL, sall, 0.0),
                              axis=1, keepdims=True) / jnp.float32(_TOPK_ALL)

        posi_loss = pos_sum / jnp.maximum(pos_cnt, 1.0)
        nega_simple = jnp.where(neg_cnt > 0.0,
                                neg_sum / jnp.maximum(neg_cnt, 1.0), 0.0)
        topk_mean = topk_acc[...] / jnp.maximum(k3, 1.0)
        nega_loss = jnp.where(neg_cnt < k3, nega_simple, topk_mean)

        contrib = jnp.where(pos_cnt > 0.0, posi_loss + nega_loss, top500_mean)
        out_ref[...] = jnp.sum(contrib, axis=0, keepdims=True)   # (1, 1)


# ----------------------------------------------------------------------------
# Wrappers
# ----------------------------------------------------------------------------
def _pick_tile(n_pad, b):
    """n_pad is a multiple of 128. Largest multiple-of-128 divisor of n_pad,
    capped (a) so kernel 1's double-buffered f32 working set stays well inside
    the default scoped VMEM on every generation (incl. v7x's 64 MiB physical)
    and (b) at n_pad // 4 so the 'parallel' axis has >= 4 steps for megacore
    sharding and DMA/compute overlap."""
    cap = (12 * 1024 * 1024) // (b * 24)          # ~12 MiB budget, 6 f32 blocks
    cap = min(cap, 8192, max(128, n_pad // 4))
    cap = max(cap, 128)
    best = 128
    t = 128
    while t <= min(cap, n_pad):
        if n_pad % t == 0:
            best = t
        t += 128
    return min(best, n_pad)


def _ohem_loss_sum(pred, label):
    """pred, label: (B, N) float arrays (any float dtype; cast in-kernel).
    Returns the scalar sum over the B rows of per-image OHEM contributions."""
    B, N = pred.shape
    assert N < (1 << 24), "float32 count lanes require N < 2**24 pixels/image"
    n_pad = ((N + 127) // 128) * 128
    if n_pad != N:
        # rare path: pad the lane axis; padded pixels masked inside kernel 1
        pred = jnp.pad(pred, ((0, 0), (0, n_pad - N)))
        label = jnp.pad(label, ((0, 0), (0, n_pad - N)))
    tile = _pick_tile(n_pad, B)
    grid_n = n_pad // tile
    blk = lambda t: (0, t)

    negm_neg, stats_raw = pl.pallas_call(
        functools.partial(_mse_stats_kernel, N, n_pad != N),
        out_shape=(jax.ShapeDtypeStruct((B, n_pad), jnp.float32),
                   jax.ShapeDtypeStruct((B, grid_n * 128), jnp.float32)),
        grid=(grid_n,),
        in_specs=[pl.BlockSpec((B, tile), blk),
                  pl.BlockSpec((B, tile), blk)],
        out_specs=(pl.BlockSpec((B, tile), blk),
                   pl.BlockSpec((B, 128), blk)),
        compiler_params=pltpu.CompilerParams(
            dimension_semantics=("parallel",)),
    )(pred, label)

    # per-image stats: lanes 0..3 = pos_cnt, pos_sum, neg_cnt, neg_sum (tiny)
    stats = stats_raw.reshape(B, grid_n, 128).sum(axis=1)         # (B, 128)

    # TODO(synk): no clean Pallas TPU sort / dynamic top-k; the per-row
    # selection remains a single ascending XLA sort of the pre-negated
    # negative losses (a streaming histogram-selection Pallas kernel would
    # remove this remaining O(N log N) pass).
    sneg_neg = jnp.sort(negm_neg, axis=1)                         # (B, n_pad)
    k_pad = min(_TOPK_PAD, n_pad)   # N < 500 diverges from torch (torch errors)
    sall_neg = sneg_neg[:, :k_pad]                                # tiny slice

    # Prefix of the sorted slab actually consumed by kernel 2: only rows that
    # take the hard-negative top-(3*pos_cnt) branch read it at all.
    pos_cnt = stats[:, 0]
    neg_cnt = stats[:, 2]
    k3 = 3.0 * pos_cnt
    need = jnp.where(jnp.logical_and(pos_cnt > 0.0, neg_cnt >= k3), k3, 0.0)
    max_k3 = jnp.max(need).astype(jnp.int32)
    last_blk = jnp.clip((max_k3 + tile - 1) // tile - 1, 0, grid_n - 1)
    last_blk = last_blk.astype(jnp.int32).reshape(1)

    out = pl.pallas_call(
        _ohem_kernel,
        out_shape=jax.ShapeDtypeStruct((1, 1), jnp.float32),
        grid_spec=pltpu.PrefetchScalarGridSpec(
            num_scalar_prefetch=1,
            grid=(grid_n,),
            in_specs=[
                # clamp past the needed prefix -> same block index -> no DMA
                pl.BlockSpec((B, tile),
                             lambda t, lb: (0, jnp.minimum(t, lb[0]))),
                pl.BlockSpec((B, k_pad), lambda t, lb: (0, 0)),
                pl.BlockSpec((B, 128), lambda t, lb: (0, 0)),
            ],
            out_specs=pl.BlockSpec((1, 1), lambda t, lb: (0, 0)),
            scratch_shapes=[pltpu.VMEM((B, 1), jnp.float32)],
        ),
        compiler_params=pltpu.CompilerParams(
            dimension_semantics=("arbitrary",)),
    )(last_blk, sneg_neg, sall_neg, stats)
    return out[0, 0]


def meshloss_forward(gh_label, gv_label, p_gh, p_gv, mask=None):
    """Forward pass of the PyTorch `meshloss` module (`mask` is unused, as in
    the reference). The h/v maps run through two independent pipelines; the
    float32 cast happens inside kernel 1."""
    B = gh_label.shape[0]
    flat = lambda x: x.reshape(B, -1)
    char_loss = _ohem_loss_sum(flat(p_gh), flat(gh_label))
    affi_loss = _ohem_loss_sum(flat(p_gv), flat(gv_label))
    return (char_loss + affi_loss) / B


# ----------------------------------------------------------------------------
# Pure-numpy reference (mirrors the PyTorch module exactly)
# ----------------------------------------------------------------------------
def _ref_single(pre_loss, label):
    B = pre_loss.shape[0]
    pre = pre_loss.reshape(B, -1).astype(np.float64)
    lab = label.reshape(B, -1).astype(np.float64)
    s = 0.0
    for i in range(B):
        pos = pre[i][lab[i] >= _POS_THRESH]
        neg = pre[i][lab[i] < _POS_THRESH]
        if len(pos) != 0:
            s += pos.mean()
            if len(neg) < 3 * len(pos):
                s += (neg.mean() if len(neg) > 0 else 0.0)
            else:
                s += np.sort(neg)[::-1][:3 * len(pos)].mean()
        else:
            s += np.sort(pre[i])[::-1][:_TOPK_ALL].mean()
    return s


def _ref_forward(gh, gv, ph, pv):
    lh = (np.asarray(ph, np.float64) - np.asarray(gh, np.float64)) ** 2
    lv = (np.asarray(pv, np.float64) - np.asarray(gv, np.float64)) ** 2
    B = lh.shape[0]
    return _ref_single(lh, gh) / B + _ref_single(lv, gv) / B


# ----------------------------------------------------------------------------
if __name__ == "__main__":
    key = jax.random.PRNGKey(0)
    B, H, W = 2, 32, 32  # N = 1024 >= 500 so the top-500 fallback is valid
    k1, k2, k3, k4, k5, k6 = jax.random.split(key, 6)

    # gh_label: batch 0 has no positives -> top-500 fallback branch;
    #           batch 1 has sparse positives -> hard-negative top-(3*pos) branch
    sparse = jax.random.uniform(k1, (B, H, W)) < 0.05
    sparse = jnp.logical_and(sparse, jnp.arange(B)[:, None, None] == 1)
    gh_label = jnp.where(
        sparse,
        jax.random.uniform(k2, (B, H, W), minval=0.3, maxval=1.0),
        jax.random.uniform(k3, (B, H, W), minval=0.0, maxval=0.05),
    ).astype(jnp.float32)
    # gv_label: dense positives -> plain negative-mean branch
    gv_label = jax.random.uniform(k4, (B, H, W), dtype=jnp.float32)
    p_gh = jax.random.uniform(k5, (B, H, W), dtype=jnp.float32)
    p_gv = jax.random.uniform(k6, (B, H, W), dtype=jnp.float32)
    mask = jnp.ones((B, H, W), jnp.float32)  # unused, kept for signature parity

    fwd = jax.jit(meshloss_forward)
    out = jax.block_until_ready(fwd(gh_label, gv_label, p_gh, p_gv, mask))

    ref = _ref_forward(np.asarray(gh_label), np.asarray(gv_label),
                       np.asarray(p_gh), np.asarray(p_gv))
    assert np.isfinite(float(out)), "non-finite loss"
    assert np.allclose(float(out), ref, rtol=1e-3, atol=1e-4), (float(out), ref)

    print("KERNEL_OK")
</pallas_src>

<mosaic_0001>
module attributes {stable_mosaic.version = 11 : i64} {
  func.func @_mse_stats_kernel(%arg0: i32, %arg1: memref<2x256xf32, #tpu.memory_space<vmem>>, %arg2: memref<2x256xf32, #tpu.memory_space<vmem>>, %arg3: memref<2x256xf32, #tpu.memory_space<vmem>>, %arg4: memref<2x128xf32, #tpu.memory_space<vmem>>) attributes {dimension_semantics = [#tpu.dimension_semantics<parallel>], iteration_bounds = array<i64: 4>, scalar_prefetch = 0 : i64, scratch_operands = 0 : i64, tpu.core_type = #tpu.core_type<tc>, window_params = [{transform_indices = @transform_0, window_bounds = array<i64: 2, 256>}, {transform_indices = @transform_1, window_bounds = array<i64: 2, 256>}, {transform_indices = @transform_2, window_bounds = array<i64: 2, 256>}, {transform_indices = @transform_3, window_bounds = array<i64: 2, 128>}]} {
    %c0 = arith.constant 0 : index
    %c0_0 = arith.constant 0 : index
    %0 = vector.load %arg1[%c0, %c0_0] : memref<2x256xf32, #tpu.memory_space<vmem>>, vector<2x256xf32>
    %c0_1 = arith.constant 0 : index
    %c0_2 = arith.constant 0 : index
    %1 = vector.load %arg2[%c0_1, %c0_2] : memref<2x256xf32, #tpu.memory_space<vmem>>, vector<2x256xf32>
    %2 = arith.subf %0, %1 : vector<2x256xf32>
    %3 = arith.mulf %2, %2 : vector<2x256xf32>
    %cst = arith.constant 1.000000e-01 : f32
    %4 = vector.broadcast %cst : f32 to vector<2x256xf32>
    %5 = arith.cmpf oge, %1, %4 : vector<2x256xf32>
    %cst_3 = arith.constant dense<true> : vector<2x256xi1>
    %6 = arith.xori %5, %cst_3 : vector<2x256xi1>
    %cst_4 = arith.constant 0.000000e+00 : f32
    %7 = vector.broadcast %cst_4 : f32 to vector<2x256xf32>
    %8 = arith.subf %7, %3 : vector<2x256xf32>
    %cst_5 = arith.constant 1.000000e+00 : f32
    %9 = vector.broadcast %cst_5 : f32 to vector<2x256xf32>
    %10 = arith.select %6, %8, %9 : vector<2x256xi1>, vector<2x256xf32>
    %c0_6 = arith.constant 0 : index
    %c0_7 = arith.constant 0 : index
    %11 = vector.load %arg3[%c0_6, %c0_7] : memref<2x256xf32, #tpu.memory_space<vmem>>, vector<2x256xf32>
    tpu.vector_store %arg3[%c0_6, %c0_7], %10 {strides = array<i32>} : memref<2x256xf32, #tpu.memory_space<vmem>>, vector<2x256xf32>,
    %12 = arith.extui %5 : vector<2x256xi1> to vector<2x256xi32>
    %13 = arith.sitofp %12 : vector<2x256xi32> to vector<2x256xf32>
    %14 = arith.extui %6 : vector<2x256xi1> to vector<2x256xi32>
    %15 = arith.sitofp %14 : vector<2x256xi32> to vector<2x256xf32>
    %cst_8 = arith.constant dense<0.000000e+00> : vector<2xf32>
    %16 = vector.multi_reduction <add>, %13, %cst_8 [1] : vector<2x256xf32> to vector<2xf32>
    %17 = vector.shape_cast %16 : vector<2xf32> to vector<2x1xf32>
    %18 = arith.mulf %3, %13 : vector<2x256xf32>
    %cst_9 = arith.constant dense<0.000000e+00> : vector<2xf32>
    %19 = vector.multi_reduction <add>, %18, %cst_9 [1] : vector<2x256xf32> to vector<2xf32>
    %20 = vector.shape_cast %19 : vector<2xf32> to vector<2x1xf32>
    %cst_10 = arith.constant dense<0.000000e+00> : vector<2xf32>
    %21 = vector.multi_reduction <add>, %15, %cst_10 [1] : vector<2x256xf32> to vector<2xf32>
    %22 = vector.shape_cast %21 : vector<2xf32> to vector<2x1xf32>
    %23 = arith.mulf %3, %15 : vector<2x256xf32>
    %cst_11 = arith.constant dense<0.000000e+00> : vector<2xf32>
    %24 = vector.multi_reduction <add>, %23, %cst_11 [1] : vector<2x256xf32> to vector<2xf32>
    %25 = vector.shape_cast %24 : vector<2xf32> to vector<2x1xf32>
    %26 = tpu.iota {dimensions = array<i32: 1>} : vector<2x128xi32>
    %c0_i32 = arith.constant 0 : i32
    %27 = vector.broadcast %c0_i32 : i32 to vector<2x128xi32>
    %28 = arith.cmpi eq, %26, %27 : vector<2x128xi32>
    %c1_i32 = arith.constant 1 : i32
    %29 = vector.broadcast %c1_i32 : i32 to vector<2x128xi32>
    %30 = arith.cmpi eq, %26, %29 : vector<2x128xi32>
    %c2_i32 = arith.constant 2 : i32
    %31 = vector.broadcast %c2_i32 : i32 to vector<2x128xi32>
    %32 = arith.cmpi eq, %26, %31 : vector<2x128xi32>
    %c3_i32 = arith.constant 3 : i32
    %33 = vector.broadcast %c3_i32 : i32 to vector<2x128xi32>
    %34 = arith.cmpi eq, %26, %33 : vector<2x128xi32>
    %cst_12 = arith.constant 0.000000e+00 : f32
    %35 = vector.shape_cast %25 : vector<2x1xf32> to vector<2x1xf32>
    %36 = vector.broadcast %35 : vector<2x1xf32> to vector<2x128xf32>
    %37 = vector.broadcast %cst_12 : f32 to vector<2x128xf32>
    %38 = arith.select %34, %36, %37 : vector<2x128xi1>, vector<2x128xf32>
    %39 = vector.shape_cast %22 : vector<2x1xf32> to vector<2x1xf32>
    %40 = vector.broadcast %39 : vector<2x1xf32> to vector<2x128xf32>
    %41 = arith.select %32, %40, %38 : vector<2x128xi1>, vector<2x128xf32>
    %42 = vector.shape_cast %20 : vector<2x1xf32> to vector<2x1xf32>
    %43 = vector.broadcast %42 : vector<2x1xf32> to vector<2x128xf32>
    %44 = arith.select %30, %43, %41 : vector<2x128xi1>, vector<2x128xf32>
    %45 = vector.shape_cast %17 : vector<2x1xf32> to vector<2x1xf32>
    %46 = vector.broadcast %45 : vector<2x1xf32> to vector<2x128xf32>
    %47 = arith.select %28, %46, %44 : vector<2x128xi1>, vector<2x128xf32>
    %c0_13 = arith.constant 0 : index
    %c0_14 = arith.constant 0 : index
    %48 = vector.load %arg4[%c0_13, %c0_14] : memref<2x128xf32, #tpu.memory_space<vmem>>, vector<2x128xf32>
    tpu.vector_store %arg4[%c0_13, %c0_14], %47 {strides = array<i32>} : memref<2x128xf32, #tpu.memory_space<vmem>>, vector<2x128xf32>,
    return
  }
  func.func @transform_0(%arg0: i32) -> (i32, i32) {
    %c0_i32 = arith.constant 0 : i32
    %c0_i32_0 = arith.constant 0 : i32
    return %c0_i32, %arg0 : i32, i32
  }
  func.func @transform_1(%arg0: i32) -> (i32, i32) {
    %c0_i32 = arith.constant 0 : i32
    %c0_i32_0 = arith.constant 0 : i32
    return %c0_i32, %arg0 : i32, i32
  }
  func.func @transform_2(%arg0: i32) -> (i32, i32) {
    %c0_i32 = arith.constant 0 : i32
    %c0_i32_0 = arith.constant 0 : i32
    return %c0_i32, %arg0 : i32, i32
  }
  func.func @transform_3(%arg0: i32) -> (i32, i32) {
    %c0_i32 = arith.constant 0 : i32
    %c0_i32_0 = arith.constant 0 : i32
    return %c0_i32, %arg0 : i32, i32
  }
}

module attributes {stable_mosaic.version = 11 : i64} {
  func.func @_ohem_kernel(%arg0: i32, %arg1: memref<1xi32, #tpu.memory_space<smem>>, %arg2: memref<2x256xf32, #tpu.memory_space<vmem>>, %arg3: memref<2x512xf32, #tpu.memory_space<vmem>>, %arg4: memref<2x128xf32, #tpu.memory_space<vmem>>, %arg5: memref<1x1xf32, #tpu.memory_space<vmem>>, %arg6: memref<2x1xf32, #tpu.memory_space<vmem>>) attributes {dimension_semantics = [#tpu.dimension_semantics<arbitrary>], iteration_bounds = array<i64: 4>, scalar_prefetch = 1 : i64, scratch_operands = 1 : i64, tpu.core_type = #tpu.core_type<tc>, window_params = [{transform_indices = @transform_0, window_bounds = array<i64: 2, 256>}, {pipeline_mode = #tpu.pipeline_mode<synchronous>, transform_indices = @transform_1, window_bounds = array<i64: 2, 512>}, {pipeline_mode = #tpu.pipeline_mode<synchronous>, transform_indices = @transform_2, window_bounds = array<i64: 2, 128>}, {pipeline_mode = #tpu.pipeline_mode<synchronous>, transform_indices = @transform_3, window_bounds = array<i64: 1, 1>}]} {
    %c0_i32 = arith.constant 0 : i32
    %0 = arith.cmpi eq, %arg0, %c0_i32 : i32
    %1 = arith.extui %0 : i1 to i32
    %c0_i32_0 = arith.constant 0 : i32
    %2 = arith.cmpi ne, %1, %c0_i32_0 : i32
    scf.if %2 {
      %cst = arith.constant 0.000000e+00 : f32
      %15 = vector.broadcast %cst : f32 to vector<2x1xf32>
      %c0_6 = arith.constant 0 : index
      %c0_7 = arith.constant 0 : index
      %16 = vector.load %arg6[%c0_6, %c0_7] : memref<2x1xf32, #tpu.memory_space<vmem>>, vector<2x1xf32>
      tpu.vector_store %arg6[%c0_6, %c0_7], %15 {strides = array<i32>} : memref<2x1xf32, #tpu.memory_space<vmem>>, vector<2x1xf32>,
    } else {
    }
    %c0 = arith.constant 0 : index
    %c0_1 = arith.constant 0 : index
    %3 = vector.load %arg4[%c0, %c0_1] : memref<2x128xf32, #tpu.memory_space<vmem>>, vector<2x128xf32>
    %4 = vector.extract_strided_slice %3 {offsets = [0, 0], sizes = [2, 1], strides = [1, 1]} : vector<2x128xf32> to vector<2x1xf32>
    %5 = arith.fptosi %4 : vector<2x1xf32> to vector<2x1xi32>
    %c3_i32 = arith.constant 3 : i32
    %6 = vector.broadcast %c3_i32 : i32 to vector<2x1xi32>
    %7 = arith.muli %6, %5 : vector<2x1xi32>
    %c0_2 = arith.constant 0 : index
    %8 = memref.load %arg1[%c0_2] : memref<1xi32, #tpu.memory_space<smem>>
    %9 = arith.cmpi sle, %arg0, %8 : i32
    %10 = arith.extui %9 : i1 to i32
    %c0_i32_3 = arith.constant 0 : i32
    %11 = arith.cmpi ne, %10, %c0_i32_3 : i32
    scf.if %11 {
      %c0_6 = arith.constant 0 : index
      %c0_7 = arith.constant 0 : index
      %15 = vector.load %arg2[%c0_6, %c0_7] : memref<2x256xf32, #tpu.memory_space<vmem>>, vector<2x256xf32>
      %cst = arith.constant 0.000000e+00 : f32
      %16 = vector.broadcast %cst : f32 to vector<2x256xf32>
      %17 = arith.subf %16, %15 : vector<2x256xf32>
      %c256_i32 = arith.constant 256 : i32
      %18 = arith.muli %arg0, %c256_i32 : i32
      %19 = tpu.iota {dimensions = array<i32: 1>} : vector<2x256xi32>
      %20 = vector.broadcast %18 : i32 to vector<2x256xi32>
      %21 = arith.addi %20, %19 : vector<2x256xi32>
      %c0_8 = arith.constant 0 : index
      %c0_9 = arith.constant 0 : index
      %22 = vector.load %arg6[%c0_8, %c0_9] : memref<2x1xf32, #tpu.memory_space<vmem>>, vector<2x1xf32>
      %23 = vector.broadcast %7 : vector<2x1xi32> to vector<2x256xi32>
      %24 = arith.cmpi slt, %21, %23 : vector<2x256xi32>
      %cst_10 = arith.constant 0.000000e+00 : f32
      %25 = vector.broadcast %cst_10 : f32 to vector<2x256xf32>
      %26 = arith.select %24, %17, %25 : vector<2x256xi1>, vector<2x256xf32>
      %cst_11 = arith.constant dense<0.000000e+00> : vector<2xf32>
      %27 = vector.multi_reduction <add>, %26, %cst_11 [1] : vector<2x256xf32> to vector<2xf32>
      %28 = vector.shape_cast %27 : vector<2xf32> to vector<2x1xf32>
      %29 = arith.addf %22, %28 : vector<2x1xf32>
      %c0_12 = arith.constant 0 : index
      %c0_13 = arith.constant 0 : index
      %30 = vector.load %arg6[%c0_12, %c0_13] : memref<2x1xf32, #tpu.memory_space<vmem>>, vector<2x1xf32>
      tpu.vector_store %arg6[%c0_12, %c0_13], %29 {strides = array<i32>} : memref<2x1xf32, #tpu.memory_space<vmem>>, vector<2x1xf32>,
    } else {
    }
    %c3_i32_4 = arith.constant 3 : i32
    %12 = arith.cmpi eq, %arg0, %c3_i32_4 : i32
    %13 = arith.extui %12 : i1 to i32
    %c0_i32_5 = arith.constant 0 : i32
    %14 = arith.cmpi ne, %13, %c0_i32_5 : i32
    scf.if %14 {
      %15 = vector.extract_strided_slice %3 {offsets = [0, 1], sizes = [2, 1], strides = [1, 1]} : vector<2x128xf32> to vector<2x1xf32>
      %16 = vector.extract_strided_slice %3 {offsets = [0, 2], sizes = [2, 1], strides = [1, 1]} : vector<2x128xf32> to vector<2x1xf32>
      %17 = vector.extract_strided_slice %3 {offsets = [0, 3], sizes = [2, 1], strides = [1, 1]} : vector<2x128xf32> to vector<2x1xf32>
      %cst = arith.constant 3.000000e+00 : f32
      %18 = vector.broadcast %cst : f32 to vector<2x1xf32>
      %19 = arith.mulf %18, %4 : vector<2x1xf32>
      %c0_6 = arith.constant 0 : index
      %c0_7 = arith.constant 0 : index
      %20 = vector.load %arg3[%c0_6, %c0_7] : memref<2x512xf32, #tpu.memory_space<vmem>>, vector<2x512xf32>
      %cst_8 = arith.constant 0.000000e+00 : f32
      %21 = vector.broadcast %cst_8 : f32 to vector<2x512xf32>
      %22 = arith.subf %21, %20 : vector<2x512xf32>
      %23 = tpu.iota {dimensions = array<i32: 1>} : vector<2x512xi32>
      %c500_i32 = arith.constant 500 : i32
      %24 = vector.broadcast %c500_i32 : i32 to vector<2x512xi32>
      %25 = arith.cmpi slt, %23, %24 : vector<2x512xi32>
      %cst_9 = arith.constant 0.000000e+00 : f32
      %26 = vector.broadcast %cst_9 : f32 to vector<2x512xf32>
      %27 = arith.select %25, %22, %26 : vector<2x512xi1>, vector<2x512xf32>
      %cst_10 = arith.constant dense<0.000000e+00> : vector<2xf32>
      %28 = vector.multi_reduction <add>, %27, %cst_10 [1] : vector<2x512xf32> to vector<2xf32>
      %29 = vector.shape_cast %28 : vector<2xf32> to vector<2x1xf32>
      %cst_11 = arith.constant 5.000000e+02 : f32
      %30 = vector.broadcast %cst_11 : f32 to vector<2x1xf32>
      %31 = arith.divf %29, %30 : vector<2x1xf32>
      %cst_12 = arith.constant 1.000000e+00 : f32
      %32 = vector.broadcast %cst_12 : f32 to vector<2x1xf32>
      %33 = arith.maximumf %4, %32 : vector<2x1xf32>
      %34 = arith.divf %15, %33 : vector<2x1xf32>
      %cst_13 = arith.constant 0.000000e+00 : f32
      %35 = vector.broadcast %cst_13 : f32 to vector<2x1xf32>
      %36 = arith.cmpf ogt, %16, %35 : vector<2x1xf32>
      %cst_14 = arith.constant 1.000000e+00 : f32
      %37 = vector.broadcast %cst_14 : f32 to vector<2x1xf32>
      %38 = arith.maximumf %16, %37 : vector<2x1xf32>
      %39 = arith.divf %17, %38 : vector<2x1xf32>
      %cst_15 = arith.constant 0.000000e+00 : f32
      %40 = vector.broadcast %cst_15 : f32 to vector<2x1xf32>
      %41 = arith.select %36, %39, %40 : vector<2x1xi1>, vector<2x1xf32>
      %c0_16 = arith.constant 0 : index
      %c0_17 = arith.constant 0 : index
      %42 = vector.load %arg6[%c0_16, %c0_17] : memref<2x1xf32, #tpu.memory_space<vmem>>, vector<2x1xf32>
      %cst_18 = arith.constant 1.000000e+00 : f32
      %43 = vector.broadcast %cst_18 : f32 to vector<2x1xf32>
      %44 = arith.maximumf %19, %43 : vector<2x1xf32>
      %45 = arith.divf %42, %44 : vector<2x1xf32>
      %46 = arith.cmpf olt, %16, %19 : vector<2x1xf32>
      %47 = arith.select %46, %41, %45 : vector<2x1xi1>, vector<2x1xf32>
      %cst_19 = arith.constant 0.000000e+00 : f32
      %48 = vector.broadcast %cst_19 : f32 to vector<2x1xf32>
      %49 = arith.cmpf ogt, %4, %48 : vector<2x1xf32>
      %50 = arith.addf %34, %47 : vector<2x1xf32>
      %51 = arith.select %49, %50, %31 : vector<2x1xi1>, vector<2x1xf32>
      %cst_20 = arith.constant dense<0.000000e+00> : vector<1xf32>
      %52 = vector.multi_reduction <add>, %51, %cst_20 [0] : vector<2x1xf32> to vector<1xf32>
      %53 = vector.shape_cast %52 : vector<1xf32> to vector<1x1xf32>
      %c0_21 = arith.constant 0 : index
      %c0_22 = arith.constant 0 : index
      %54 = vector.load %arg5[%c0_21, %c0_22] : memref<1x1xf32, #tpu.memory_space<vmem>>, vector<1x1xf32>
      tpu.vector_store %arg5[%c0_21, %c0_22], %53 {strides = array<i32>} : memref<1x1xf32, #tpu.memory_space<vmem>>, vector<1x1xf32>,
    } else {
    }
    return
  }
  func.func @transform_0(%arg0: i32, %arg1: memref<1xi32, #tpu.memory_space<smem>>) -> (i32, i32) {
    %c0 = arith.constant 0 : index
    %0 = memref.load %arg1[%c0] : memref<1xi32, #tpu.memory_space<smem>>
    %1 = arith.minsi %arg0, %0 : i32
    %c0_i32 = arith.constant 0 : i32
    %c0_i32_0 = arith.constant 0 : i32
    return %c0_i32, %1 : i32, i32
  }
  func.func @transform_1(%arg0: i32, %arg1: memref<1xi32, #tpu.memory_space<smem>>) -> (i32, i32) {
    %c0_i32 = arith.constant 0 : i32
    %c0_i32_0 = arith.constant 0 : i32
    %c0_i32_1 = arith.constant 0 : i32
    return %c0_i32, %c0_i32_0 : i32, i32
  }
  func.func @transform_2(%arg0: i32, %arg1: memref<1xi32, #tpu.memory_space<smem>>) -> (i32, i32) {
    %c0_i32 = arith.constant 0 : i32
    %c0_i32_0 = arith.constant 0 : i32
    %c0_i32_1 = arith.constant 0 : i32
    return %c0_i32, %c0_i32_0 : i32, i32
  }
  func.func @transform_3(%arg0: i32, %arg1: memref<1xi32, #tpu.memory_space<smem>>) -> (i32, i32) {
    %c0_i32 = arith.constant 0 : i32
    %c0_i32_0 = arith.constant 0 : i32
    %c0_i32_1 = arith.constant 0 : i32
    return %c0_i32, %c0_i32_0 : i32, i32
  }
}

</mosaic_0001>

<bundles_post_ra>
// kernel: meshloss_forward.6
= control target key start
LH: loop header
LB: loop body
LE: loop exit
PB: predicated region body
PF: predicated region fallthrough
CT: control target
= control target key end

     0   :  { %s433_s12 = smov 0   ;;  %s469_s0 = inlined_call_operand.vmem [shape: f32[2,1024], index: 0, kind: input, shape index: {}]   ;;  %s470_s1 = inlined_call_operand.vmem [shape: f32[2,1024], index: 1, kind: input, shape index: {}]   ;;  %s471_s2 = inlined_call_operand.vmem [shape: f32[2,1024], index: 2, kind: output, shape index: {0}]   ;;  %s472_s3 = inlined_call_operand.vmem [shape: f32[2,512], index: 3, kind: output, shape index: {1}]  }
   0x1 LB: > { %s439_s13 = sadd.s32 4294967295, %s409_s12   ;;  %p381_p0 = scmp.ge.s32.totalorder %s409_s12, 1  ;;  %s409_s12 = sphi %s433_s12, %s14_s12  }
   0x2   : > { %p152_p1 = scmp.lt.s32.totalorder %s409_s12, 5 }
   0x4   : > { %p153_p2 = pnand %p381_p0, %p152_p1 }
   0x5   : > { %s382_s14 = sshll.u32 (!%p153_p2), %s439_s13, 1  ;;  %p203_p4 = scmp.lt.s32.totalorder (!%p153_p2), %s439_s13, 3 }
   0x6   : > { %156 = sbr.rel (%p153_p2) target bundleno = 181 (0xb5), region = 28  ;;  %p186_p3 = scmp.lt.s32.totalorder (!%p153_p2), %s382_s14, 7 }
   0xb   : > { %s474_s14 = smov (!%p186_p3, %s382_s14), 7  ;;  %v411_v3 = vmov 0.0   ;;  %vm412_vm1 = vmmov 1   ;;  %vm226_vm3 = vcmask 1041408   ;;  %v267_v31 = vlaneseq  ;;  %s476_s13 = smov (!%p203_p4, %s439_s13), 3 }
   0xc   : > { %s383_s15 = sshll.u32 %s474_s14, 1  ;;  %s388_s25 = sshll.u32 %s476_s13, 1 }
   0xd   : > { %s189_s18 = scalar_lea.vmem %s469_s0, %s383_s15  ;;  %s195_s21 = scalar_lea.vmem %s470_s1, %s383_s15  ;;  %v268_v34 = vand.u32 127, %v267_v31 }
   0xe   : > { %v207_v0 = vld [vmem:[%s189_s18] sm:$0xf]  ;;  %s201_s24 = scalar_lea.vmem %s471_s2, %s383_s15  ;;  %s206_s28 = scalar_lea.vmem %s472_s3, %s388_s25 }
   0xf   : > { %v208_v1 = vld [vmem:[%s195_s21] sm:$0xf]  ;;  %vm272_vm4 = vcmp.eq.s32.totalorder %v268_v34, 3  ;;  %vm271_vm5 = vcmp.eq.s32.totalorder %v268_v34, 2  ;;  %vm270_vm6 = vcmp.eq.s32.totalorder %v268_v34, 1  ;;  %vm269_vm7 = vcmp.eq.s32.totalorder %v268_v34, 0 }
  0x10   : > { %v209_v2 = vsub.f32 %v207_v0, %v208_v1  ;;  %vm211_vm0 = vcmp.ge.f32.partialorder %v208_v1, 0.1 }
  0x11   : > { %v389_v4 = vsel %vm211_vm0, 1.0, %v411_v3  ;;  %vm212_vm2 = vmxor %vm211_vm0, %vm412_vm1 }
  0x12   : > { %v210_v5 = vmul.f32 %v209_v2, %v209_v2  ;;  %221 = vst [vmem:[#allocation1] ss:$4 sm:$0xff] %v389_v4  ;;  %v390_v11 = vsel %vm212_vm2, 1.0, %v411_v3 }
  0x14   : > { %v213_v6 = vsub.f32 0.0, %v210_v5  ;;  %v232_v7 = vmul.f32 %v389_v4, %v210_v5  ;;  %v255_v17 = vmul.f32 %v390_v11, %v210_v5 }
  0x16   : > { %v214_v8 = vsel %vm212_vm2, %v213_v6, 1.0 }
  0x17   : > { %215 = vst [vmem:[%s201_s24] sm:$0xf] %v214_v8 }
  0x19   : > { %v222_v9 = vld.sshfl [vmem:[#allocation1] sm:$0xff pattern:$0x73625140]  ;;  %v223_v10 = vld.sshfl [vmem:[#allocation1 + $0x8] sm:$0xff pattern:$0x73625140] }
  0x1a   : > { %234 = vst [vmem:[#allocation1] ss:$4 sm:$0xff] %v232_v7  ;;  %v227_v18 = vsel %vm226_vm3, %v222_v9, 0.0  ;;  %v228_v19 = vsel %vm226_vm3, %v223_v10, 0.0 }
  0x1b   : > { %v229_v22 = vadd.f32 %v228_v19, %v227_v18 }
  0x21   : > { %v235_v12 = vld.sshfl [vmem:[#allocation1] sm:$0xff pattern:$0x73625140]  ;;  %v236_v13 = vld.sshfl [vmem:[#allocation1 + $0x8] sm:$0xff pattern:$0x73625140] }
  0x22   : > { %245 = vst [vmem:[#allocation1] ss:$4 sm:$0xff] %v390_v11  ;;  %v239_v14 = vsel %vm226_vm3, %v235_v12, 0.0  ;;  %v240_v15 = vsel %vm226_vm3, %v236_v13, 0.0 }
  0x23   : > { %v241_v16 = vadd.f32 %v240_v15, %v239_v14 }
  0x25   : > { %242 = vadd.xlane.f32.xlu1 %v241_v16 }
  0x29   : > { %v246_v20 = vld.sshfl [vmem:[#allocation1] sm:$0xff pattern:$0x73625140]  ;;  %v247_v21 = vld.sshfl [vmem:[#allocation1 + $0x8] sm:$0xff pattern:$0x73625140] }
  0x2a   : > { %257 = vst [vmem:[#allocation1] ss:$4 sm:$0xff] %v255_v17  ;;  %v250_v28 = vsel %vm226_vm3, %v246_v20, 0.0  ;;  %v251_v29 = vsel %vm226_vm3, %v247_v21, 0.0 }
  0x2b   : > { %v252_v30 = vadd.f32 %v251_v29, %v250_v28 }
  0x2d   : > { %230 = vadd.xlane.f32.xlu1 %v229_v22 }
  0x31   : > { %v258_v23 = vld.sshfl [vmem:[#allocation1] sm:$0xff pattern:$0x73625140]  ;;  %v259_v24 = vld.sshfl [vmem:[#allocation1 + $0x8] sm:$0xff pattern:$0x73625140] }
  0x32   : > { %v262_v25 = vsel %vm226_vm3, %v258_v23, 0.0  ;;  %v263_v26 = vsel %vm226_vm3, %v259_v24, 0.0 }
  0x33   : > { %v264_v27 = vadd.f32 %v263_v26, %v262_v25 }
  0x35   : > { %265 = vadd.xlane.f32.xlu0 %v264_v27 }
  0x3d   : > { %253 = vadd.xlane.f32.xlu0 %v252_v30 }
  0x98   : > { %v243_v32 = vpop.xlane.xlu1 %242 }
  0xa0   : > { %v231_v37 = vpop.xlane.xlu1 %230 }
  0xa8   : > { %v266_v33 = vpop.xlane.xlu0 %265 }
  0xa9   : > { %v273_v35 = vsel %vm272_vm4, %v266_v33, 0.0 }
  0xb0   : > { %v254_v36 = vpop.xlane.xlu0 %253 }
  0xb1   : > { %v274_v38 = vsel %vm271_vm5, %v254_v36, %v273_v35 }
  0xb2   : > { %v275_v39 = vsel %vm270_vm6, %v243_v32, %v274_v38 }
  0xb3   : > { %v276_v40 = vsel %vm269_vm7, %v231_v37, %v275_v39 }
  0xb4   : > { %277 = vst [vmem:[%s206_s28] sm:$0x3] %v276_v40 }
  0xb5 PF: > { %s14_s12 = sadd.s32 1, %s409_s12  }
  0xb6   : > { %p11_p5 = scmp.ge.s32.totalorder %s14_s12, 6  }
  0xb8   :  { %13 = sbr.rel (!%p11_p5) target bundleno = 1 (0x1), region = 73 }

// kernel: meshloss_forward.7
= control target key start
LH: loop header
LB: loop body
LE: loop exit
PB: predicated region body
PF: predicated region fallthrough
CT: control target
= control target key end

     0   :  { %s568_s0 = inlined_call_operand.<no memory space> [shape: s32[1], index: 0, kind: input, shape index: {}]   ;;  %s569_s1 = inlined_call_operand.vmem [shape: f32[2,1024], index: 1, kind: input, shape index: {}]   ;;  %s570_s2 = inlined_call_operand.vmem [shape: f32[2,512], index: 2, kind: input, shape index: {}]   ;;  %s571_s3 = inlined_call_operand.vmem [shape: f32[2,128], index: 3, kind: input, shape index: {}]   ;;  %s572_s4 = inlined_call_operand.hbm [shape: f32[1,1], index: 4, kind: output, shape index: {}]  }
   0x1   :  { %9 = sst [smem:[#allocation4]] %s568_s0 }
   0x2   :  { %10 = vsyncpa [#allocation6], 0  ;;  %s519_s17 = smov 0  }
   0x3 LB: > { %s525_s18 = sadd.s32 4294967295, %s482_s17   ;;  %p400_p0 = scmp.ge.s32.totalorder %s482_s17, 1  ;;  %s482_s17 = sphi %s519_s17, %s16_s17  }
   0x4   : > { %p148_p1 = scmp.lt.s32.totalorder %s482_s17, 5 }
   0x6   : > { %p149_p2 = pnand %p400_p0, %p148_p1 }
   0x7   : > { %s170_s19 = sld [smem:[#allocation4]] (!%p149_p2)  ;;  %p403_p5 = scmp.ne.s32.totalorder (!%p149_p2), %s525_s18, 0 }
   0x8   : > { %152 = sbr.rel (%p149_p2) target bundleno = 767 (0x2ff), region = 32 }
   0xd   : > { %p171_p3 = scmp.lt.s32.totalorder %s525_s18, %s170_s19 }
   0xf   : > { %s172_s0 = scalar_select %p171_p3, %s525_s18, %s170_s19 }
  0x11   : > { %s401_s20 = sshll.u32 %s172_s0, 1 }
  0x12   : > { %p174_p4 = scmp.lt.s32.totalorder %s401_s20, 7  ;;  %185 = sbr.rel (%p403_p5) target bundleno = 25 (0x19), region = 36 }
  0x14   : > { %s574_s20 = smov (!%p174_p4, %s401_s20), 7 }
  0x15   : > { %s402_s21 = sshll.u32 %s574_s20, 1 }
  0x16   : > { %s177_s24 = scalar_lea.vmem %s569_s1, %s402_s21 }
  0x17   : > { %vm186_vm0 = vcmask 1024   ;;  %v484_v0 = vmov 0.0  }
  0x18   : > { %187 = vst.msk [vmem:[#allocation2] sm:$0x3] %vm186_vm0, %v484_v0 }
  0x19 PF: > { %v538_v1 = vld [vmem:[%s571_s3] sm:$0x3]  ;;  %s191_s27 = sld [smem:[#allocation4]] }
  0x1a   : > { %vm411_vm1 = vcmp.lt.s32.totalorder %v538_v1, 0  ;;  %v412_v2 = vceil.f32 %v538_v1  ;;  %v413_v3 = vfloor.f32 %v538_v1 }
  0x1c   : > { %v414_v4 = vsel %vm411_vm1, %v412_v2, %v413_v3 }
  0x1d   : > { %v415_v5 = vcvt.f32.s32 %v414_v4 }
  0x1f   : > { %v190_v6 = vmul.u32 3, %v415_v5  ;;  %p404_p6 = scmp.gt.s32.totalorder %s525_s18, %s191_s27 }
  0x20   : > { %s405_s28 = sshll.u32 (!%p404_p6), %s525_s18, 8 }
  0x21   : > { %195 = sbr.rel (%p404_p6) target bundleno = 279 (0x117), region = 40 }
  0x26   : > { %v485_v7 = vmov 0   ;;  %v196_v8 = vld [vmem:[%s177_s24] sm:$0xf]  ;;  %v199_v10 = vlaneseq  ;;  %v202_v13 = vstv %s405_s28  ;;  %vm219_vm2 = vcmask 1041408   ;;  %v205_v24 = vld [vmem:[#allocation2] sm:$0x3] }
  0x27   : > { %437 = vset.pattern.permute.xlu0 %v485_v7  ;;  %v197_v9 = vsub.f32 0.0, %v196_v8  ;;  %vm226_vm5 = vcmask 1024  }
  0x28   : > { %207 = vperm.xlu0 %437, %v190_v6   ;;  %v200_v11 = vand.u32 127, %v199_v10 }
  0x29   : > { %212 = vst [vmem:[#allocation1] ss:$4 sm:$0xff] %v197_v9 }
  0x2a   : > { %v201_v12 = vadd.s32 128, %v200_v11  ;;  %v203_v14 = vadd.s32 %v202_v13, %v200_v11 }
  0x2c   : > { %v204_v15 = vadd.s32 %v202_v13, %v201_v12 }
  0x30   : > { %v213_v16 = vld.sshfl [vmem:[#allocation1] sm:$0xff pattern:$0x73625140]  ;;  %v214_v17 = vld.sshfl [vmem:[#allocation1 + $0x8] sm:$0xff pattern:$0x73625140] }
  0x9a   : > { %v208_v18 = vpop.permute.xlu0 %207 }
  0x9b   : > { %vm209_vm3 = vcmp.lt.s32.totalorder %v203_v14, %v208_v18  ;;  %vm210_vm4 = vcmp.lt.s32.totalorder %v204_v15, %v208_v18 }
  0x9c   : > { %v217_v19 = vsel %vm209_vm3, %v213_v16, 0.0  ;;  %v218_v20 = vsel %vm210_vm4, %v214_v17, 0.0 }
  0x9d   : > { %v220_v21 = vsel %vm219_vm2, %v217_v19, 0.0  ;;  %v221_v22 = vsel %vm219_vm2, %v218_v20, 0.0 }
  0x9e   : > { %v222_v23 = vadd.f32 %v221_v22, %v220_v21 }
  0xa0   : > { %223 = vadd.xlane.f32.xlu0 %v222_v23 }
 0x113   : > { %v224_v25 = vpop.xlane.xlu0 %223 }
 0x114   : > { %v225_v26 = vadd.f32 %v224_v25, %v205_v24 }
 0x116   : > { %227 = vst.msk [vmem:[#allocation2] sm:$0x3] %vm226_vm5, %v225_v26 }
 0x117 PF: > { %p406_p7 = scmp.ne.s32.totalorder %s525_s18, 3 }
 0x118   : > { %s486_s29 = smov (!%p406_p7), 1   ;;  %s487_s30 = smov (!%p406_p7), 2  }
 0x119   : > { %231 = sbr.rel (%p406_p7) target bundleno = 762 (0x2fa), region = 44  ;;  %s488_s5 = smov (!%p406_p7), 127  }
 0x11e   : > { %v276_v27 = vmax.f32 %v538_v1, 1.0  ;;  %v232_v28 = vmul.f32 3.0, %v538_v1  ;;  %v302_v39 = vld [vmem:[#allocation2] sm:$0x3]  ;;  %v233_v54 = vld [vmem:[%s570_s2] sm:$0xff]  ;;  %vm296_vm14 = vcmp.gt.f32.partialorder %v538_v1, 0.0  ;;  %v235_v61 = vlaneseq }
 0x11f   : > { %v234_v55 = vsub.f32 0.0, %v233_v54  ;;  %vm258_vm0 = vcmask 1041408   ;;  %v489_v15 = vmov 500.0   ;;  %vm339_vm3 = vcmask 1024  }
 0x120   : > { %278 = vrot.lane.b32.xlu0 %v276_v27, %s486_s29  ;;  %320 = vrot.lane.b32.xlu1 %v232_v28, %s487_s30  ;;  %v303_v29 = vmax.f32 %v232_v28, 1.0  ;;  %v236_v62 = vand.u32 127, %v235_v61  ;;  %vm347_vm4 = vcmask 0  }
 0x121   : > { %245 = vst [vmem:[#allocation1] ss:$4 sm:$0xff] %v234_v55 }
 0x122   : > { %438 = vrcp.f32 %v303_v29  ;;  %v315_v34 = vand.u32 2147483648, %v303_v29  ;;  %vm309_vm6 = vweird.f32 %v303_v29  ;;  %v313_v36 = vand.u32 2147483647, %v303_v29 }
 0x123   : > { %v239_v2 = vadd.s32 384, %v236_v62 }
 0x124   : > { %v316_v37 = vor.u32 1.1754944e-38, %v315_v34  ;;  %vm314_vm9 = vcmp.eq.f32.partialorder %v313_v36, 8.507059e+37 }
 0x125   : > { %vm243_vm1 = vcmp.lt.s32.totalorder %v239_v2, 500 }
 0x128   : > { %v439_v30 = vpop.eup %438  ;;  %v246_v63 = vld.sshfl [vmem:[#allocation1] sm:$0xff pattern:$0x73625140]  ;;  %v247_v0 = vld.sshfl [vmem:[#allocation1 + $0x8] sm:$0xff pattern:$0x73625140] }
 0x129   : > { %v305_v31 = vmul.f32 %v439_v30, %v303_v29  ;;  %vm310_vm7 = vweird.f32 %v439_v30  ;;  %v259_v3 = vsel %vm258_vm0, %v246_v63, 0.0  ;;  %v260_v4 = vsel %vm258_vm0, %v247_v0, 0.0  ;;  %v248_v5 = vld.sshfl [vmem:[#allocation1 + $0x10] sm:$0xff pattern:$0x73625140] }
 0x12a   : > { %vm311_vm8 = vmor %vm309_vm6, %vm310_vm7  ;;  %v249_v6 = vld.sshfl [vmem:[#allocation1 + $0x18] sm:$0xff pattern:$0x73625140]  ;;  %v261_v7 = vadd.f32 %v260_v4, %v259_v3  ;;  %v262_v8 = vsel %vm258_vm0, %v248_v5, 0.0 }
 0x12b   : > { %v306_v32 = vsub.f32 1.0, %v305_v31  ;;  %v257_v9 = vsel %vm243_vm1, %v249_v6, 0.0 }
 0x12c   : > { %v263_v10 = vadd.f32 %v262_v8, %v261_v7  ;;  %v264_v11 = vsel %vm258_vm0, %v257_v9, 0.0 }
 0x12d   : > { %v307_v33 = vmul.f32 %v439_v30, %v306_v32 }
 0x12e   : > { %v265_v12 = vadd.f32 %v264_v11, %v263_v10 }
 0x12f   : > { %v308_v35 = vadd.f32 %v439_v30, %v307_v33 }
 0x131   : > { %v312_v38 = vsel %vm311_vm8, %v439_v30, %v308_v35 }
 0x132   : > { %v317_v40 = vsel %vm314_vm9, %v316_v37, %v312_v38 }
 0x133   : > { %v318_v41 = vmul.f32 %v317_v40, %v302_v39 }
 0x135   : > { %325 = vrot.lane.b32.xlu1 %v318_v41, %s487_s30 }
 0x192   : > { %v279_v42 = vpop.permute.xlu0 %278  ;;  %v321_v56 = vpop.permute.xlu1 %320 }
 0x193   : > { %440 = vrcp.f32 %v279_v42  ;;  %v292_v46 = vand.u32 2147483648, %v279_v42  ;;  %v290_v48 = vand.u32 2147483647, %v279_v42  ;;  %vm286_vm11 = vweird.f32 %v279_v42 }
 0x194   : > { %vm323_vm15 = vcmp.lt.f32.partialorder %v538_v1, %v321_v56  ;;  %442 = vrcp.f32 %v489_v15 }
 0x195   : > { %v293_v50 = vor.u32 1.1754944e-38, %v292_v46  ;;  %vm291_vm13 = vcmp.eq.f32.partialorder %v290_v48, 8.507059e+37 }
 0x199   : > { %v441_v43 = vpop.eup %440 }
 0x19a   : > { %v282_v44 = vmul.f32 %v441_v43, %v279_v42  ;;  %vm287_vm10 = vweird.f32 %v441_v43  ;;  %v443_v16 = vpop.eup %442 }
 0x19b   : > { %vm288_vm12 = vmor %vm286_vm11, %vm287_vm10  ;;  %v269_v17 = vmul.f32 500.0, %v443_v16  ;;  %vm273_vm2 = vweird.f32 %v443_v16 }
 0x19c   : > { %v283_v45 = vsub.f32 1.0, %v282_v44 }
 0x19d   : > { %v270_v18 = vsub.f32 1.0, %v269_v17 }
 0x19e   : > { %v284_v47 = vmul.f32 %v441_v43, %v283_v45 }
 0x19f   : > { %v271_v19 = vmul.f32 %v443_v16, %v270_v18 }
 0x1a0   : > { %v285_v49 = vadd.f32 %v441_v43, %v284_v47 }
 0x1a1   : > { %v272_v20 = vadd.f32 %v443_v16, %v271_v19 }
 0x1a2   : > { %v289_v51 = vsel %vm288_vm12, %v441_v43, %v285_v49 }
 0x1a3   : > { %v294_v52 = vsel %vm291_vm13, %v293_v50, %v289_v51  ;;  %v274_v21 = vsel %vm273_vm2, %v443_v16, %v272_v20 }
 0x1a4   : > { %v295_v53 = vmul.f32 %v294_v52, %v538_v1 }
 0x1a6   : > { %298 = vrot.lane.b32.xlu0 %v295_v53, %s488_s5 }
 0x1a7   : > { %v326_v57 = vpop.permute.xlu1 %325 }
 0x218   : > { %v299_v58 = vpop.permute.xlu0 %298 }
 0x219   : > { %v301_v59 = vsel %vm296_vm14, %v299_v58, 0.0 }
 0x21a   : > { %v328_v60 = vsel %vm323_vm15, %v301_v59, %v326_v57 }
 0x21b   : > { %330 = vrot.lane.b32.xlu2 %v328_v60, %s488_s5 }
 0x244   : > { %266 = vadd.xlane.f32.xlu2 %v265_v12 }
 0x275   : > { %v331_v13 = vpop.permute.xlu2 %330 }
 0x276   : > { %v333_v14 = vadd.f32 %v331_v13, %v295_v53 }
 0x278   : > { %335 = vrot.lane.b32.xlu0 %v333_v14, %s488_s5 }
 0x2b7   : > { %v267_v22 = vpop.xlane.xlu2 %266 }
 0x2b8   : > { %v275_v23 = vmul.f32 %v274_v21, %v267_v22 }
 0x2ea   : > { %v336_v24 = vpop.permute.xlu0 %335 }
 0x2eb   : > { %v338_v25 = vsel %vm296_vm14, %v336_v24, %v275_v23 }
 0x2ec   : > { %v340_v26 = vsel %vm339_vm3, %v338_v25, 0.0 }
 0x2ed   : > { %v341_v27 = vrot.slane %v340_v26, 4 }
 0x2ef   : > { %v342_v28 = vadd.f32 %v341_v27, %v340_v26 }
 0x2f1   : > { %v343_v29 = vrot.slane %v342_v28, 2 }
 0x2f3   : > { %v344_v30 = vadd.f32 %v343_v29, %v342_v28 }
 0x2f5   : > { %v345_v31 = vrot.slane %v344_v30, 1 }
 0x2f7   : > { %v346_v32 = vadd.f32 %v345_v31, %v344_v30 }
 0x2f9   : > { %348 = vst.msk [vmem:[#allocation5] sm:$0x1] %vm347_vm4, %v346_v32 }
 0x2fa PF: > { %p420_p8 = scmp.eq.s32.totalorder %s525_s18, 3  ;;  %s490_s8 = smov [#allocation5]  }
 0x2fb   : > { %s355_s9 = sshll.u32 %s490_s8, 4  ;;  %s357_s12 = sshll.u32 %s572_s4, 4  ;;  %s356_s9 = int_to_ptr.vmem [resolvable:$true] %s355_s9  ;;  %s358_s12 = int_to_ptr.hbm [resolvable:$true] %s357_s12 }
 0x2fc   : > { %417 = dma.vmem_to_hbm [thread:$0]  (%p420_p8), %s356_s9, 16, %s358_s12, [#allocation6]  }
 0x2fd   : > { %477 = dma.done.wait (%p420_p8), [#allocation6], 16  }
 0x2fe   : > { %479 = vsyncadd (%p420_p8), [#allocation6], 4294967280 }
 0x2ff PF: > { %s16_s17 = sadd.s32 1, %s482_s17  }
 0x300   : > { %p13_p9 = scmp.ge.s32.totalorder %s16_s17, 6  }
 0x302   :  { %15 = sbr.rel (!%p13_p9) target bundleno = 3 (0x3), region = 71 }
 0x307   :  { %371 = vsyncpa [#allocation6], 1 }
 0x308   :  { %373 = vsyncpa [#allocation6 + $0x1], 1 }

</bundles_post_ra>
